<compile_context>
chip_gen: v5e
topology: v5e:2x2
jax: 0.10.0
libtpu: 0.0.40
codegen_flags: <defaults>
</compile_context>

<pallas_src>
import math

import numpy as np
import jax
import jax.numpy as jnp
from jax import lax
from jax.experimental import pallas as pl
from jax.experimental.pallas import tpu as pltpu


# --------------------------------------------------------------------------- #
# Kernels
# --------------------------------------------------------------------------- #
def _qkv_projection_kernel(x_ref, wqkv_ref, bqkv_ref, q_ref, k_ref, v_ref):
    """One wide matmul: (tile, D) @ (D, 3D) + b -> slices written to Q/K/V."""
    d = q_ref.shape[-1]
    qkv = (jnp.dot(x_ref[...], wqkv_ref[...],
                   preferred_element_type=jnp.float32) + bqkv_ref[...])
    q_ref[...] = qkv[:, 0 * d:1 * d].astype(q_ref.dtype)
    k_ref[...] = qkv[:, 1 * d:2 * d].astype(k_ref.dtype)
    v_ref[...] = qkv[:, 2 * d:3 * d].astype(v_ref.dtype)


def _attention_kernel(q_ref, k_ref, v_ref, attn_ref, out_ref):
    """Per query-row tile: scores (pre-scaled Q) + softmax + attend."""
    q = q_ref[...]                       # (tile, D) — already scaled by 1/sqrt(D)
    k = k_ref[...]                       # (N, D), resident for every tile
    v = v_ref[...]                       # (N, D)

    # scores = q @ k.T via dimension numbers (no explicit transpose).
    scores = lax.dot_general(q, k, (((1,), (1,)), ((), ())),
                             preferred_element_type=jnp.float32)

    # Numerically stable softmax over the key axis; divide -> EUP reciprocal.
    m = jnp.max(scores, axis=-1, keepdims=True)
    e = jnp.exp(scores - m)
    denom = jnp.sum(e, axis=-1, keepdims=True)
    attn = e * pl.reciprocal(denom, approx=True)

    attn_ref[...] = attn.astype(attn_ref.dtype)
    out_ref[...] = jnp.dot(attn, v,
                           preferred_element_type=jnp.float32
                           ).astype(out_ref.dtype)


# --------------------------------------------------------------------------- #
# VMEM-budget-aware tile selection
# --------------------------------------------------------------------------- #
def _vmem_capacity_bytes():
    try:
        info = pltpu.get_tpu_info()
        cap = int(getattr(info, "vmem_capacity_bytes", 0))
        if cap > 0:
            return cap
    except Exception:
        pass
    # Conservative fallback: v7x per-TensorCore VMEM (the smallest generation).
    return 64 * 1024 * 1024


def _candidate_tiles(n):
    """Divisors of n that are multiples of 8 (plus n itself), largest first."""
    tiles = [t for t in range(8, n + 1, 8) if n % t == 0]
    tiles.append(n)
    return sorted(set(tiles), reverse=True)


def _pick_tile(n, per_row_bytes, fixed_bytes, budget_bytes):
    cands = _candidate_tiles(n)
    for t in cands:
        if fixed_bytes + t * per_row_bytes <= budget_bytes:
            return t
    return cands[-1]   # smallest legal tile; best effort if budget is tiny


# --------------------------------------------------------------------------- #
# Wrapper
# --------------------------------------------------------------------------- #
def feature_attention_stats(x, wq, bq, wk, bk, wv, bv):
    """x: (N, D) float32. w*: (D, D) nn.Linear weights (out, in). b*: (D,)."""
    N, D = x.shape
    assert wq.shape == (D, D) and wk.shape == (D, D) and wv.shape == (D, D)

    f32 = jnp.float32
    x = jnp.asarray(x, f32)
    scale = 1.0 / math.sqrt(D)

    # nn.Linear computes x @ W.T + b; transpose once at trace time and fold
    # the softmax scale into the query projection (weights AND bias).
    wq_t = jnp.asarray(wq, f32).T * scale
    wk_t = jnp.asarray(wk, f32).T
    wv_t = jnp.asarray(wv, f32).T
    bq_s = jnp.asarray(bq, f32) * scale
    wqkv = jnp.concatenate([wq_t, wk_t, wv_t], axis=1)            # (D, 3D)
    bqkv = jnp.concatenate(
        [bq_s, jnp.asarray(bk, f32), jnp.asarray(bv, f32)]).reshape(1, 3 * D)

    cap = _vmem_capacity_bytes()
    vmem_limit = int(cap * 0.85)          # explicit scoped-VMEM limit, headroom
    tile_budget = int(cap * 0.45)         # pipeline-buffer budget for tiling

    # ---------------- stage 1: fused Q|K|V projection --------------------- #
    # Footprint per grid step (f32, double-buffered windows + intermediates).
    proj_fixed = 2 * (D * 3 * D + 3 * D) * 4            # wqkv + bqkv
    proj_per_row = (2 * D + 2 * 3 * D + 3 * D) * 4      # x in, q/k/v out, qkv tmp
    proj_tile = _pick_tile(N, proj_per_row, proj_fixed, tile_budget)

    q, k, v = pl.pallas_call(
        _qkv_projection_kernel,
        out_shape=(jax.ShapeDtypeStruct((N, D), f32),
                   jax.ShapeDtypeStruct((N, D), f32),
                   jax.ShapeDtypeStruct((N, D), f32)),
        grid_spec=pltpu.PrefetchScalarGridSpec(
            num_scalar_prefetch=0,
            grid=(N // proj_tile,),
            in_specs=[
                pl.BlockSpec((proj_tile, D), lambda i: (i, 0)),   # x rows
                pl.BlockSpec((D, 3 * D), lambda i: (0, 0)),       # Wq^T|Wk^T|Wv^T
                pl.BlockSpec((1, 3 * D), lambda i: (0, 0)),       # bq|bk|bv
            ],
            out_specs=[
                pl.BlockSpec((proj_tile, D), lambda i: (i, 0)),   # Q (pre-scaled)
                pl.BlockSpec((proj_tile, D), lambda i: (i, 0)),   # K
                pl.BlockSpec((proj_tile, D), lambda i: (i, 0)),   # V
            ],
        ),
        compiler_params=pltpu.CompilerParams(
            dimension_semantics=("parallel",),
            vmem_limit_bytes=vmem_limit,
        ),
    )(x, wqkv, bqkv)

    # ---------------- stage 2: scores + softmax + attend ------------------ #
    # No cross-step dependency -> the row-tile axis is megacore-parallel.
    attn_fixed = 2 * 2 * N * D * 4                       # K and V windows
    attn_per_row = (2 * D + 2 * N + 2 * D + 2 * N) * 4   # q in, attn/out out, scores/e tmp
    row_tile = _pick_tile(N, attn_per_row, attn_fixed, tile_budget)

    attn, out = pl.pallas_call(
        _attention_kernel,
        out_shape=(jax.ShapeDtypeStruct((N, N), f32),    # attention_weights
                   jax.ShapeDtypeStruct((N, D), f32)),   # attended_values
        grid_spec=pltpu.PrefetchScalarGridSpec(
            num_scalar_prefetch=0,
            grid=(N // row_tile,),
            in_specs=[
                pl.BlockSpec((row_tile, D), lambda i: (i, 0)),    # Q tile
                pl.BlockSpec((N, D), lambda i: (0, 0)),           # K (constant idx)
                pl.BlockSpec((N, D), lambda i: (0, 0)),           # V (constant idx)
            ],
            out_specs=[
                pl.BlockSpec((row_tile, N), lambda i: (i, 0)),    # attention_weights
                pl.BlockSpec((row_tile, D), lambda i: (i, 0)),    # attended_values
            ],
        ),
        compiler_params=pltpu.CompilerParams(
            dimension_semantics=("parallel",),
            vmem_limit_bytes=vmem_limit,
        ),
    )(q, k, v)

    return attn, out


# --------------------------------------------------------------------------- #
# Pure-JAX reference (mirrors the PyTorch forward exactly)
# --------------------------------------------------------------------------- #
def _reference(x, wq, bq, wk, bk, wv, bv):
    hp = jax.lax.Precision.HIGHEST
    q = jnp.dot(x, wq.T, precision=hp) + bq
    k = jnp.dot(x, wk.T, precision=hp) + bk
    v = jnp.dot(x, wv.T, precision=hp) + bv
    scores = jnp.dot(q, k.T, precision=hp) / math.sqrt(x.shape[-1])
    attn = jax.nn.softmax(scores, axis=-1)
    out = jnp.dot(attn, v, precision=hp)
    return attn, out


if __name__ == "__main__":
    key = jax.random.PRNGKey(0)
    keys = jax.random.split(key, 7)

    # input_size = sequences_dim + timestamps_dim + embedding_dim + 1
    seq_dim, ts_dim, emb_dim = 19, 8, 100
    input_size = seq_dim + ts_dim + emb_dim + 1        # = 128
    N = 32                                             # rows of the 2-D stats matrix

    x = jax.random.normal(keys[0], (N, input_size), dtype=jnp.float32)

    # PyTorch nn.Linear default init: U(-1/sqrt(in), 1/sqrt(in)).
    bound = 1.0 / math.sqrt(input_size)

    def uinit(k, shape):
        return jax.random.uniform(k, shape, jnp.float32, -bound, bound)

    wq = uinit(keys[1], (input_size, input_size)); bq = uinit(keys[2], (input_size,))
    wk = uinit(keys[3], (input_size, input_size)); bk = uinit(keys[4], (input_size,))
    wv = uinit(keys[5], (input_size, input_size)); bv = uinit(keys[6], (input_size,))

    attn, out = feature_attention_stats(x, wq, bq, wk, bk, wv, bv)
    attn = jax.block_until_ready(attn)
    out = jax.block_until_ready(out)

    ref_attn, ref_out = _reference(x, wq, bq, wk, bk, wv, bv)
    np.testing.assert_allclose(np.asarray(attn), np.asarray(ref_attn),
                               rtol=1e-2, atol=1e-2)
    np.testing.assert_allclose(np.asarray(out), np.asarray(ref_out),
                               rtol=1e-2, atol=1e-2)

    print("KERNEL_OK")
</pallas_src>

<mosaic_0001>
module attributes {stable_mosaic.version = 11 : i64} {
  func.func @_qkv_projection_kernel(%arg0: i32, %arg1: memref<32x128xf32, #tpu.memory_space<vmem>>, %arg2: memref<128x384xf32, #tpu.memory_space<vmem>>, %arg3: memref<1x384xf32, #tpu.memory_space<vmem>>, %arg4: memref<32x128xf32, #tpu.memory_space<vmem>>, %arg5: memref<32x128xf32, #tpu.memory_space<vmem>>, %arg6: memref<32x128xf32, #tpu.memory_space<vmem>>) attributes {dimension_semantics = [#tpu.dimension_semantics<parallel>], iteration_bounds = array<i64: 1>, scalar_prefetch = 0 : i64, scratch_operands = 0 : i64, tpu.core_type = #tpu.core_type<tc>, window_params = [{transform_indices = @transform_0, window_bounds = array<i64: 32, 128>}, {pipeline_mode = #tpu.pipeline_mode<synchronous>, transform_indices = @transform_1, window_bounds = array<i64: 128, 384>}, {pipeline_mode = #tpu.pipeline_mode<synchronous>, transform_indices = @transform_2, window_bounds = array<i64: 1, 384>}, {transform_indices = @transform_3, window_bounds = array<i64: 32, 128>}, {transform_indices = @transform_4, window_bounds = array<i64: 32, 128>}, {transform_indices = @transform_5, window_bounds = array<i64: 32, 128>}]} {
    %c0 = arith.constant 0 : index
    %c0_0 = arith.constant 0 : index
    %0 = vector.load %arg1[%c0, %c0_0] : memref<32x128xf32, #tpu.memory_space<vmem>>, vector<32x128xf32>
    %c0_1 = arith.constant 0 : index
    %c0_2 = arith.constant 0 : index
    %1 = vector.load %arg2[%c0_1, %c0_2] : memref<128x384xf32, #tpu.memory_space<vmem>>, vector<128x384xf32>
    %cst = arith.constant dense<0.000000e+00> : vector<32x384xf32>
    %2 = tpu.matmul %0, %1, %cst {dimension_numbers = #tpu.dot_dimension_numbers<[1], [0], [0], [1], [0, 0, 1, 1], [], []>} : vector<32x128xf32>, vector<128x384xf32>, vector<32x384xf32> -> vector<32x384xf32>
    %c0_3 = arith.constant 0 : index
    %c0_4 = arith.constant 0 : index
    %3 = vector.load %arg3[%c0_3, %c0_4] : memref<1x384xf32, #tpu.memory_space<vmem>>, vector<1x384xf32>
    %4 = vector.broadcast %3 : vector<1x384xf32> to vector<32x384xf32>
    %5 = arith.addf %2, %4 : vector<32x384xf32>
    %6 = vector.extract_strided_slice %5 {offsets = [0, 0], sizes = [32, 128], strides = [1, 1]} : vector<32x384xf32> to vector<32x128xf32>
    %c0_5 = arith.constant 0 : index
    %c0_6 = arith.constant 0 : index
    %7 = vector.load %arg4[%c0_5, %c0_6] : memref<32x128xf32, #tpu.memory_space<vmem>>, vector<32x128xf32>
    tpu.vector_store %arg4[%c0_5, %c0_6], %6 {strides = array<i32>} : memref<32x128xf32, #tpu.memory_space<vmem>>, vector<32x128xf32>,
    %8 = vector.extract_strided_slice %5 {offsets = [0, 128], sizes = [32, 128], strides = [1, 1]} : vector<32x384xf32> to vector<32x128xf32>
    %c0_7 = arith.constant 0 : index
    %c0_8 = arith.constant 0 : index
    %9 = vector.load %arg5[%c0_7, %c0_8] : memref<32x128xf32, #tpu.memory_space<vmem>>, vector<32x128xf32>
    tpu.vector_store %arg5[%c0_7, %c0_8], %8 {strides = array<i32>} : memref<32x128xf32, #tpu.memory_space<vmem>>, vector<32x128xf32>,
    %10 = vector.extract_strided_slice %5 {offsets = [0, 256], sizes = [32, 128], strides = [1, 1]} : vector<32x384xf32> to vector<32x128xf32>
    %c0_9 = arith.constant 0 : index
    %c0_10 = arith.constant 0 : index
    %11 = vector.load %arg6[%c0_9, %c0_10] : memref<32x128xf32, #tpu.memory_space<vmem>>, vector<32x128xf32>
    tpu.vector_store %arg6[%c0_9, %c0_10], %10 {strides = array<i32>} : memref<32x128xf32, #tpu.memory_space<vmem>>, vector<32x128xf32>,
    return
  }
  func.func @transform_0(%arg0: i32) -> (i32, i32) {
    %c0_i32 = arith.constant 0 : i32
    %c0_i32_0 = arith.constant 0 : i32
    return %arg0, %c0_i32 : i32, i32
  }
  func.func @transform_1(%arg0: i32) -> (i32, i32) {
    %c0_i32 = arith.constant 0 : i32
    %c0_i32_0 = arith.constant 0 : i32
    %c0_i32_1 = arith.constant 0 : i32
    return %c0_i32, %c0_i32_0 : i32, i32
  }
  func.func @transform_2(%arg0: i32) -> (i32, i32) {
    %c0_i32 = arith.constant 0 : i32
    %c0_i32_0 = arith.constant 0 : i32
    %c0_i32_1 = arith.constant 0 : i32
    return %c0_i32, %c0_i32_0 : i32, i32
  }
  func.func @transform_3(%arg0: i32) -> (i32, i32) {
    %c0_i32 = arith.constant 0 : i32
    %c0_i32_0 = arith.constant 0 : i32
    return %arg0, %c0_i32 : i32, i32
  }
  func.func @transform_4(%arg0: i32) -> (i32, i32) {
    %c0_i32 = arith.constant 0 : i32
    %c0_i32_0 = arith.constant 0 : i32
    return %arg0, %c0_i32 : i32, i32
  }
  func.func @transform_5(%arg0: i32) -> (i32, i32) {
    %c0_i32 = arith.constant 0 : i32
    %c0_i32_0 = arith.constant 0 : i32
    return %arg0, %c0_i32 : i32, i32
  }
}

</mosaic_0001>

<bundles_post_ra>
// kernel: tpu_custom_call.1
= control target key start
LH: loop header
LB: loop body
LE: loop exit
PB: predicated region body
PF: predicated region fallthrough
CT: control target
= control target key end

     0   :  { %11 = vsyncpa [#allocation3], 0  ;;  %s526_s0 = inlined_call_operand.hbm [shape: f32[32,128], index: 0, kind: input, shape index: {}]   ;;  %s527_s1 = inlined_call_operand.hbm [shape: f32[128,384], index: 1, kind: input, shape index: {}]   ;;  %s528_s2 = inlined_call_operand.hbm [shape: f32[1,384], index: 2, kind: input, shape index: {}]   ;;  %s529_s3 = inlined_call_operand.hbm [shape: f32[32,128], index: 3, kind: output, shape index: {0}]   ;;  %s530_s4 = inlined_call_operand.hbm [shape: f32[32,128], index: 4, kind: output, shape index: {1}]   ;;  %s531_s5 = inlined_call_operand.hbm [shape: f32[32,128], index: 5, kind: output, shape index: {2}]  }
   0x1   :  { %12 = vsyncpa [#allocation6], 0 }
   0x2   :  { %13 = vsyncpa [#allocation4], 0  ;;  %s32_s20 = sshll.u32 %s527_s1, 4  ;;  %s33_s20 = int_to_ptr.hbm [resolvable:$true] %s32_s20 }
   0x3   :  { %14 = vsyncpa [#allocation10], 0  ;;  %s456_s21 = smov [#allocation5]   ;;  %s19_s25 = sshll.u32 %s526_s0, 4  ;;  %s20_s25 = int_to_ptr.hbm [resolvable:$true] %s19_s25 }
   0x4   :  { %s34_s22 = sshll.u32 %s456_s21, 4  ;;  %s457_s26 = smov 384   ;;  %s35_s22 = int_to_ptr.vmem [resolvable:$true] %s34_s22 }
   0x5   :  { %s458_s27 = smov 24   ;;  %s459_s28 = smov [#allocation2]  }
   0x6   :  { %40 = dma.hbm_to_vmem [thread:$0]  %s33_s20, 6144, %s35_s22, [#allocation6], %s457_s26, %s457_s26, %s458_s27  }
   0x7   :  { %s21_s29 = sshll.u32 %s459_s28, 4  ;;  %s460_s30 = smov 128   ;;  %s22_s29 = int_to_ptr.vmem [resolvable:$true] %s21_s29 }
   0x8   :  { %s461_s6 = smov 8   ;;  %s46_s8 = sshll.u32 %s528_s2, 4  ;;  %s47_s8 = int_to_ptr.hbm [resolvable:$true] %s46_s8 }
   0x9   :  { %27 = dma.hbm_to_vmem [thread:$0]  %s20_s25, 512, %s22_s29, [#allocation3], %s460_s30, %s460_s30, %s461_s6  }
   0xa   :  { %s462_s9 = smov [#allocation7]  }
   0xb   :  { %s48_s0 = sshll.u32 %s462_s9, 4  ;;  %s49_s0 = int_to_ptr.vmem [resolvable:$true] %s48_s0 }
   0xc   :  { %51 = dma.hbm_to_vmem [thread:$0]  %s47_s8, 48, %s49_s0, [#allocation6]  }
   0xd   :  { %448 = dma.done.wait [#allocation3], 512  }
   0xe   :  { %449 = vsyncadd [#allocation3], 4294966784 }
   0xf   :  { %450 = dma.done.wait [#allocation6], 6192  }
  0x10   :  { %451 = vsyncadd [#allocation6], 4294961104  ;;  %v115_v0 = vld [vmem:[#allocation5 + $0x178] sm:$0xff]  ;;  %v112_v1 = vld [vmem:[#allocation5 + $0x160] sm:$0xff]  ;;  %s463_s2 = smov [#allocation8]   ;;  %s229_s13 = sshll.u32 %s529_s3, 4  ;;  %s230_s13 = int_to_ptr.hbm [resolvable:$true] %s229_s13 }
  0x11   :  { %182 = vmatpush.msra.mxu2 %v115_v0  ;;  %v114_v2 = vld [vmem:[#allocation5 + $0x170] sm:$0xff]  ;;  %v111_v3 = vld [vmem:[#allocation5 + $0x158] sm:$0xff]  ;;  %v109_v4 = vld [vmem:[#allocation5 + $0x148] sm:$0xff]  ;;  %s227_s10 = sshll.u32 %s463_s2, 4  ;;  %s464_s14 = smov [#allocation9]   ;;  %s228_s10 = int_to_ptr.vmem [resolvable:$true] %s227_s10 }
  0x12   :  { %153 = vmatpush.msra.mxu1 %v114_v2  ;;  %v113_v5 = vld [vmem:[#allocation5 + $0x168] sm:$0xff]  ;;  %v108_v6 = vld [vmem:[#allocation5 + $0x140] sm:$0xff]  ;;  %v110_v7 = vld [vmem:[#allocation5 + $0x150] sm:$0xff]  ;;  %s240_s15 = sshll.u32 %s464_s14, 4  ;;  %s242_s18 = sshll.u32 %s530_s4, 4  ;;  %s241_s15 = int_to_ptr.vmem [resolvable:$true] %s240_s15  ;;  %s243_s18 = int_to_ptr.hbm [resolvable:$true] %s242_s18 }
  0x13   :  { %183 = vmatpush.msra.mxu2 %v112_v1  ;;  %278 = vmatpush.msra.mxu3 %v113_v5  ;;  %v106_v8 = vld [vmem:[#allocation5 + $0x130] sm:$0xff]  ;;  %v107_v9 = vld [vmem:[#allocation5 + $0x138] sm:$0xff]  ;;  %v105_v10 = vld [vmem:[#allocation5 + $0x128] sm:$0xff]  ;;  %s465_s19 = smov [#allocation11]   ;;  %s255_s22 = sshll.u32 %s531_s5, 4  ;;  %s256_s22 = int_to_ptr.hbm [resolvable:$true] %s255_s22 }
  0x14   :  { %154 = vmatpush.msra.mxu1 %v111_v3  ;;  %124 = vmatpush.msra.mxu0 %v113_v5  ;;  %v103_v11 = vld [vmem:[#allocation5 + $0x118] sm:$0xff]  ;;  %v104_v12 = vld [vmem:[#allocation5 + $0x120] sm:$0xff]  ;;  %v102_v13 = vld [vmem:[#allocation5 + $0x110] sm:$0xff]  ;;  %s253_s20 = sshll.u32 %s465_s19, 4  ;;  %s254_s20 = int_to_ptr.vmem [resolvable:$true] %s253_s20 }
  0x15   :  { %184 = vmatpush.msra.mxu2 %v109_v4  ;;  %279 = vmatpush.msra.mxu3 %v110_v7  ;;  %v100_v14 = vld [vmem:[#allocation5 + $0x100] sm:$0xff]  ;;  %v101_v15 = vld [vmem:[#allocation5 + $0x108] sm:$0xff]  ;;  %v99_v16 = vld [vmem:[#allocation5 + $0xf8] sm:$0xff] }
  0x16   :  { %155 = vmatpush.msra.mxu1 %v108_v6  ;;  %125 = vmatpush.msra.mxu0 %v110_v7  ;;  %v97_v17 = vld [vmem:[#allocation5 + $0xe8] sm:$0xff]  ;;  %v98_v18 = vld [vmem:[#allocation5 + $0xf0] sm:$0xff]  ;;  %v96_v19 = vld [vmem:[#allocation5 + $0xe0] sm:$0xff] }
  0x17   :  { %185 = vmatpush.msra.mxu2 %v106_v8  ;;  %280 = vmatpush.msra.mxu3 %v107_v9  ;;  %v94_v20 = vld [vmem:[#allocation5 + $0xd0] sm:$0xff]  ;;  %v95_v21 = vld [vmem:[#allocation5 + $0xd8] sm:$0xff]  ;;  %v93_v22 = vld [vmem:[#allocation5 + $0xc8] sm:$0xff] }
  0x18   :  { %156 = vmatpush.msra.mxu1 %v105_v10  ;;  %126 = vmatpush.msra.mxu0 %v107_v9  ;;  %v91_v23 = vld [vmem:[#allocation5 + $0xb8] sm:$0xff]  ;;  %v92_v24 = vld [vmem:[#allocation5 + $0xc0] sm:$0xff]  ;;  %v90_v25 = vld [vmem:[#allocation5 + $0xb0] sm:$0xff] }
  0x19   :  { %186 = vmatpush.msra.mxu2 %v103_v11  ;;  %281 = vmatpush.msra.mxu3 %v104_v12  ;;  %v88_v26 = vld [vmem:[#allocation5 + $0xa0] sm:$0xff]  ;;  %v89_v27 = vld [vmem:[#allocation5 + $0xa8] sm:$0xff]  ;;  %v87_v28 = vld [vmem:[#allocation5 + $0x98] sm:$0xff] }
  0x1a   :  { %157 = vmatpush.msra.mxu1 %v102_v13  ;;  %127 = vmatpush.msra.mxu0 %v104_v12  ;;  %v85_v29 = vld [vmem:[#allocation5 + $0x88] sm:$0xff]  ;;  %v86_v30 = vld [vmem:[#allocation5 + $0x90] sm:$0xff]  ;;  %v84_v31 = vld [vmem:[#allocation5 + $0x80] sm:$0xff] }
  0x1b   :  { %187 = vmatpush.msra.mxu2 %v100_v14  ;;  %282 = vmatpush.msra.mxu3 %v101_v15  ;;  %v82_v32 = vld [vmem:[#allocation5 + $0x70] sm:$0xff]  ;;  %v83_v33 = vld [vmem:[#allocation5 + $0x78] sm:$0xff]  ;;  %v81_v34 = vld [vmem:[#allocation5 + $0x68] sm:$0xff] }
  0x1c   :  { %158 = vmatpush.msra.mxu1 %v99_v16  ;;  %128 = vmatpush.msra.mxu0 %v101_v15  ;;  %v79_v35 = vld [vmem:[#allocation5 + $0x58] sm:$0xff]  ;;  %v80_v36 = vld [vmem:[#allocation5 + $0x60] sm:$0xff]  ;;  %v78_v37 = vld [vmem:[#allocation5 + $0x50] sm:$0xff] }
  0x1d   :  { %188 = vmatpush.msra.mxu2 %v97_v17  ;;  %283 = vmatpush.msra.mxu3 %v98_v18  ;;  %v76_v38 = vld [vmem:[#allocation5 + $0x40] sm:$0xff]  ;;  %v77_v39 = vld [vmem:[#allocation5 + $0x48] sm:$0xff]  ;;  %v75_v40 = vld [vmem:[#allocation5 + $0x38] sm:$0xff] }
  0x1e   :  { %159 = vmatpush.msra.mxu1 %v96_v19  ;;  %129 = vmatpush.msra.mxu0 %v98_v18  ;;  %v73_v41 = vld [vmem:[#allocation5 + $0x28] sm:$0xff]  ;;  %v74_v42 = vld [vmem:[#allocation5 + $0x30] sm:$0xff]  ;;  %v72_v43 = vld [vmem:[#allocation5 + $0x20] sm:$0xff] }
  0x1f   :  { %189 = vmatpush.msra.mxu2 %v94_v20  ;;  %284 = vmatpush.msra.mxu3 %v95_v21  ;;  %v70_v44 = vld [vmem:[#allocation5 + $0x10] sm:$0xff]  ;;  %v71_v45 = vld [vmem:[#allocation5 + $0x18] sm:$0xff]  ;;  %v64_v46 = vld [vmem:[#allocation2] sm:$0xff] }
  0x20   :  { %160 = vmatpush.msra.mxu1 %v93_v22  ;;  %130 = vmatpush.msra.mxu0 %v95_v21  ;;  %v69_v47 = vld [vmem:[#allocation5 + $0x8] sm:$0xff]  ;;  %v68_v48 = vld [vmem:[#allocation5] sm:$0xff]  ;;  %v66_v50 = vld [vmem:[#allocation2 + $0x10] sm:$0xff] }
  0x21   :  { %190 = vmatpush.msra.mxu2 %v91_v23  ;;  %285 = vmatpush.msra.mxu3 %v92_v24  ;;  %v65_v49 = vld [vmem:[#allocation2 + $0x8] sm:$0xff]  ;;  %v67_v51 = vld [vmem:[#allocation2 + $0x18] sm:$0xff]  ;;  %v116_v52 = vld [vmem:[#allocation7] sm:$0x7] }
  0x22   :  { %161 = vmatpush.msra.mxu1 %v90_v25  ;;  %131 = vmatpush.msra.mxu0 %v92_v24  ;;  %v119_v53 = vperm.slane %v116_v52, 1  ;;  %v120_v56 = vperm.slane %v116_v52, 2  ;;  %v118_v57 = vperm.slane %v116_v52, 0 }
  0x23   :  { %191 = vmatpush.msra.mxu2 %v88_v26  ;;  %286 = vmatpush.msra.mxu3 %v89_v27 }
  0x24   :  { %162 = vmatpush.msra.mxu1 %v87_v28  ;;  %132 = vmatpush.msra.mxu0 %v89_v27 }
  0x25   :  { %192 = vmatpush.msra.mxu2 %v85_v29  ;;  %287 = vmatpush.msra.mxu3 %v86_v30 }
  0x26   :  { %163 = vmatpush.msra.mxu1 %v84_v31  ;;  %133 = vmatpush.msra.mxu0 %v86_v30 }
  0x27   :  { %193 = vmatpush.msra.mxu2 %v82_v32  ;;  %288 = vmatpush.msra.mxu3 %v83_v33 }
  0x28   :  { %164 = vmatpush.msra.mxu1 %v81_v34  ;;  %134 = vmatpush.msra.mxu0 %v83_v33 }
  0x29   :  { %194 = vmatpush.msra.mxu2 %v79_v35  ;;  %289 = vmatpush.msra.mxu3 %v80_v36 }
  0x2a   :  { %165 = vmatpush.msra.mxu1 %v78_v37  ;;  %135 = vmatpush.msra.mxu0 %v80_v36 }
  0x2b   :  { %195 = vmatpush.msra.mxu2 %v76_v38  ;;  %290 = vmatpush.msra.mxu3 %v77_v39 }
  0x2c   :  { %166 = vmatpush.msra.mxu1 %v75_v40  ;;  %136 = vmatpush.msra.mxu0 %v77_v39 }
  0x2d   :  { %196 = vmatpush.msra.mxu2 %v73_v41  ;;  %291 = vmatpush.msra.mxu3 %v74_v42 }
  0x2e   :  { %167 = vmatpush.msra.mxu1 %v72_v43  ;;  %137 = vmatpush.msra.mxu0 %v74_v42 }
  0x2f   :  { %197 = vmatpush.msra.mxu2 %v70_v44  ;;  %292 = vmatpush.msra.mxu3 %v71_v45 }
  0x30   :  { %198 = vmatmul.f32.vlgmr.msra.gmra.mxu2 %v64_v46  ;;  %168 = vmatpush.msra.mxu1 %v69_v47 }
  0x31   :  { %169 = vmatmul.f32.vlgmr.msra.gmra.mxu1 %v64_v46  ;;  %293 = vmatpush.msra.mxu3 %v68_v48 }
  0x32   :  { %143 = vmatmul.f32.vlgmr.msra.gmra.mxu3 %v65_v49  ;;  %138 = vmatpush.msra.mxu0 %v71_v45 }
  0x34   :  { %139 = vmatpush.msra.mxu0 %v68_v48 }
  0x35   :  { %140 = vmatmul.f32.vlgmr.msra.gmra.mxu0 %v64_v46 }
  0x38   :  { %201 = vmatmul.f32.gmra.mxu2 %v65_v49 }
  0x39   :  { %172 = vmatmul.f32.gmra.mxu1 %v65_v49 }
  0x3a   :  { %146 = vmatmul.f32.gmra.mxu3 %v66_v50 }
  0x40   :  { %204 = vmatmul.f32.gmra.mxu2 %v66_v50 }
  0x41   :  { %175 = vmatmul.f32.gmra.mxu1 %v66_v50 }
  0x42   :  { %149 = vmatmul.f32.gmra.mxu3 %v67_v51 }
  0x48   :  { %207 = vmatmul.f32.gmra.mxu2 %v67_v51 }
  0x49   :  { %178 = vmatmul.f32.gmra.mxu1 %v67_v51 }
  0xae   :  { %v170_v54 = vpop.f32.mrf.mxu1 }
  0xaf   :  { %v171_v55 = vadd.f32 %v170_v54, %v119_v53 }
  0xb1   :  { %215 = vst [vmem:[#allocation9] sm:$0xff] %v171_v55 }
  0xb2   :  { %v141_v58 = vpop.f32.mrf.mxu0 }
  0xb3   :  { %v199_v59 = vpop.f32.mrf.mxu2  ;;  %v142_v60 = vadd.f32 %v141_v58, %v118_v57 }
  0xb4   :  { %v200_v61 = vadd.f32 %v199_v59, %v120_v56 }
  0xb5   :  { %v144_v62 = vpop.f32.mrf.mxu3  ;;  %211 = vst [vmem:[#allocation8] sm:$0xff] %v142_v60 }
  0xb6   :  { %219 = vst [vmem:[#allocation11] sm:$0xff] %v200_v61  ;;  %v173_v63 = vpop.f32.mrf.mxu1  ;;  %v145_v0 = vadd.f32 %v144_v62, %v118_v57 }
  0xb7   :  { %v174_v1 = vadd.f32 %v173_v63, %v119_v53 }
  0xb8   :  { %212 = vst [vmem:[#allocation8 + $0x8] sm:$0xff] %v145_v0 }
  0xb9   :  { %216 = vst [vmem:[#allocation9 + $0x8] sm:$0xff] %v174_v1 }
  0xbb   :  { %v202_v2 = vpop.f32.mrf.mxu2 }
  0xbc   :  { %v203_v3 = vadd.f32 %v202_v2, %v120_v56 }
  0xbd   :  { %v147_v4 = vpop.f32.mrf.mxu3 }
  0xbe   :  { %220 = vst [vmem:[#allocation11 + $0x8] sm:$0xff] %v203_v3  ;;  %v176_v5 = vpop.f32.mrf.mxu1  ;;  %v148_v6 = vadd.f32 %v147_v4, %v118_v57 }
  0xbf   :  { %v177_v7 = vadd.f32 %v176_v5, %v119_v53 }
  0xc0   :  { %213 = vst [vmem:[#allocation8 + $0x10] sm:$0xff] %v148_v6 }
  0xc1   :  { %217 = vst [vmem:[#allocation9 + $0x10] sm:$0xff] %v177_v7 }
  0xc3   :  { %v205_v8 = vpop.f32.mrf.mxu2 }
  0xc4   :  { %v206_v9 = vadd.f32 %v205_v8, %v120_v56 }
  0xc5   :  { %v150_v10 = vpop.f32.mrf.mxu3 }
  0xc6   :  { %221 = vst [vmem:[#allocation11 + $0x10] sm:$0xff] %v206_v9  ;;  %v179_v11 = vpop.f32.mrf.mxu1  ;;  %v151_v12 = vadd.f32 %v150_v10, %v118_v57 }
  0xc7   :  { %v180_v13 = vadd.f32 %v179_v11, %v119_v53 }
  0xc8   :  { %214 = vst [vmem:[#allocation8 + $0x18] sm:$0xff] %v151_v12 }
  0xc9   :  { %218 = vst [vmem:[#allocation9 + $0x18] sm:$0xff] %v180_v13  ;;  %235 = dma.vmem_to_hbm [thread:$0]  %s228_s10, 512, %s230_s13, [#allocation4], %s460_s30, %s460_s30, %s461_s6  }
  0xca   :  { %248 = dma.vmem_to_hbm [thread:$0]  %s241_s15, 512, %s243_s18, [#allocation10], %s460_s30, %s460_s30, %s461_s6  }
  0xcb   :  { %v208_v14 = vpop.f32.mrf.mxu2 }
  0xcc   :  { %v209_v15 = vadd.f32 %v208_v14, %v120_v56 }
  0xce   :  { %222 = vst [vmem:[#allocation11 + $0x18] sm:$0xff] %v209_v15 }
  0xcf   :  { %261 = dma.vmem_to_hbm [thread:$0]  %s254_s20, 512, %s256_s22, [#allocation10], %s460_s30, %s460_s30, %s461_s6  }
  0xd0   :  { %452 = dma.done.wait [#allocation4], 512  }
  0xd1   :  { %453 = vsyncadd [#allocation4], 4294966784 }
  0xd2   :  { %454 = dma.done.wait [#allocation10], 1024  }
  0xd3   :  { %455 = vsyncadd [#allocation10], 4294966272 }
  0xd4   :  { %274 = vsyncpa [#allocation3], 1 }
  0xd5   :  { %275 = vsyncpa [#allocation6], 1 }
  0xd6   :  { %276 = vsyncpa [#allocation4], 1 }
  0xd7   :  { %277 = vsyncpa [#allocation10], 1 }

</bundles_post_ra>
